<compile_context>
chip_gen: v7x
topology: tpu7x:2x2x1
jax: 0.10.0
libtpu: 0.0.40
codegen_flags: <defaults>
</compile_context>

<pallas_src>
import functools
import math

import jax
import jax.numpy as jnp
from jax.experimental import pallas as pl
from jax.experimental.pallas import tpu as pltpu

_LANE = 128
_SUBLANE = 8
_TARGET_BYTES = 8 * 1024 * 1024          # per-input-block byte target
_MAX_BLOCK_ELEMS = 4 * 1024 * 1024       # cap element count (sub-f32 dtypes)
_MIN_SPLIT_BLOCK_BYTES = 1 << 20         # don't fragment below ~1 MiB blocks


def _rmsnorm_kernel(x_ref, gamma_ref, o_ref, *, eps: float):
    # x_ref:     (tile_rows, tile_cols) VMEM tile
    # gamma_ref: (1, tile_cols)         VMEM tile (broadcast over rows)
    x = x_ref[...].astype(jnp.float32)
    g = gamma_ref[...].astype(jnp.float32)
    o_ref[...] = (x * jax.lax.rsqrt(x * x + eps) * g).astype(o_ref.dtype)


def _choose_tiles(rows: int, cols: int, itemsize: int) -> tuple[int, int]:
    """Pick a legal, bandwidth-friendly (tile_rows, tile_cols)."""
    target_elems = max(_LANE, min(_TARGET_BYTES // itemsize, _MAX_BLOCK_ELEMS))

    # ---- feature-axis tile: full dim when it fits, else lane-dense 128-mult.
    max_cols = max(_LANE, target_elems // _SUBLANE)
    if cols <= max_cols:
        tile_cols = cols                       # full dim (always legal)
    else:
        tile_cols = max(_LANE, (max_cols // _LANE) * _LANE)   # 128-multiple

    # ---- row-axis tile targeting ~target_elems per block.
    tile_rows = max(1, target_elems // tile_cols)
    if tile_rows >= rows:
        tile_rows = rows                       # full rows (always legal)
    else:
        tile_rows = max(_SUBLANE, (tile_rows // _SUBLANE) * _SUBLANE)
        tile_rows = min(tile_rows, rows)

    # ---- guarantee grid steps for megacore (v7x has 2 TCs sharded via the
    # "parallel" axes).  Only bother when there's enough work to amortize the
    # ~0.35us per-step overhead on single-TC chips too.
    total_bytes = rows * cols * itemsize
    if total_bytes >= (16 << 20):
        min_steps = 4
    elif total_bytes >= (4 << 20):
        min_steps = 2
    else:
        min_steps = 1

    def _steps(tr, tc):
        return pl.cdiv(rows, tr) * pl.cdiv(cols, tc)

    # Shrink rows first (keeps the lane-dense column width) ...
    while _steps(tile_rows, tile_cols) < min_steps and tile_rows > _SUBLANE:
        nr = ((tile_rows // 2) // _SUBLANE) * _SUBLANE
        if nr < _SUBLANE or nr * tile_cols * itemsize < _MIN_SPLIT_BLOCK_BYTES:
            break
        tile_rows = nr
    # ... then split the feature axis (few rows, huge hidden).
    while _steps(tile_rows, tile_cols) < min_steps and tile_cols > _LANE:
        nc = ((tile_cols // 2) // _LANE) * _LANE
        if nc < _LANE or tile_rows * nc * itemsize < _MIN_SPLIT_BLOCK_BYTES:
            break
        tile_cols = nc

    return tile_rows, tile_cols


def _pick_flat_width(n_total: int, dim: int, itemsize: int):
    """Width L for the flattened lane-dense view: L % 128 == 0, dim | L, L | N."""
    base = (dim * _LANE) // math.gcd(dim, _LANE)    # lcm(dim, 128)
    if n_total == 0 or n_total % base != 0:
        return None
    target_elems = max(_LANE, min(_TARGET_BYTES // itemsize, _MAX_BLOCK_ELEMS))
    cap = min(target_elems // _SUBLANE, n_total)
    if n_total >= _SUBLANE * base:
        cap = min(cap, n_total // _SUBLANE)         # keep >= 8 rows if possible
    cap = max(cap, base)
    best = base
    k = cap // base
    while k > 1:
        if n_total % (base * k) == 0:
            best = base * k
            break
        k -= 1
    return best


def _rmsnorm_2d(x2d: jax.Array, gamma2d: jax.Array, eps: float) -> jax.Array:
    rows, cols = x2d.shape
    itemsize = jnp.dtype(x2d.dtype).itemsize
    g_itemsize = jnp.dtype(gamma2d.dtype).itemsize

    tile_rows, tile_cols = _choose_tiles(rows, cols, itemsize)
    grid = (pl.cdiv(rows, tile_rows), pl.cdiv(cols, tile_cols))

    # VMEM budget: double-buffered in + out blocks, gamma, plus slack for
    # Mosaic internal scratch / f32 intermediates.  Clamp below v7x's 64 MiB.
    block_bytes = tile_rows * tile_cols * itemsize
    gamma_bytes = tile_cols * g_itemsize
    vmem_limit = 4 * block_bytes + 4 * gamma_bytes + (16 << 20)
    vmem_limit = int(max(32 << 20, min(vmem_limit, 56 << 20)))

    cost = pl.CostEstimate(
        flops=4 * rows * cols,
        transcendentals=rows * cols,
        bytes_accessed=2 * rows * cols * itemsize + cols * g_itemsize,
    )

    return pl.pallas_call(
        functools.partial(_rmsnorm_kernel, eps=float(eps)),
        out_shape=jax.ShapeDtypeStruct((rows, cols), x2d.dtype),
        grid_spec=pltpu.PrefetchScalarGridSpec(
            num_scalar_prefetch=0,
            grid=grid,
            in_specs=[
                pl.BlockSpec((tile_rows, tile_cols), lambda i, j: (i, j)),
                pl.BlockSpec((1, tile_cols), lambda i, j: (0, j)),
            ],
            out_specs=pl.BlockSpec((tile_rows, tile_cols), lambda i, j: (i, j)),
        ),
        compiler_params=pltpu.CompilerParams(
            dimension_semantics=("parallel", "parallel"),
            vmem_limit_bytes=vmem_limit,
        ),
        cost_estimate=cost,
    )(x2d, gamma2d)


def rmsnorm(x: jax.Array, gamma: jax.Array, eps: float = 1e-6) -> jax.Array:
    """Elementwise RMSNorm variant matching the reference PyTorch module."""
    orig_shape = x.shape
    dim = orig_shape[-1]
    assert gamma.shape == (dim,)

    n_total = x.size
    itemsize = jnp.dtype(x.dtype).itemsize

    if dim % _LANE != 0:
        # Lane-dense flattened view: (N/L, L) with L a 128-multiple, dim | L,
        # L | N.  Column c of the view maps to gamma[(c % dim)] because dim | L.
        L = _pick_flat_width(n_total, dim, itemsize)
        if L is not None:
            x2d = x.reshape(n_total // L, L)
            gamma2d = jnp.tile(gamma, L // dim).reshape(1, L)
            out2d = _rmsnorm_2d(x2d, gamma2d, eps)
            return out2d.reshape(orig_shape)
        # TODO(synk): N not divisible by lcm(dim,128) falls back to the
        # (rows, dim) layout with masked partial stores on the ragged lanes.

    x2d = x.reshape(-1, dim)
    gamma2d = gamma.reshape(1, dim)
    out2d = _rmsnorm_2d(x2d, gamma2d, eps)
    return out2d.reshape(orig_shape)


if __name__ == "__main__":
    key = jax.random.PRNGKey(0)
    batch, seq, hidden = 2, 8, 32

    x = jax.random.normal(key, (batch, seq, hidden), dtype=jnp.float32)
    # Deterministic parameter init: gama = ones(dim), as in the module __init__.
    gamma = jnp.ones((hidden,), dtype=jnp.float32)
    eps = 1e-6

    out = rmsnorm(x, gamma, eps)
    out = jax.block_until_ready(out)

    # Reference check against a pure-JAX implementation of the same formula.
    ref = x * jax.lax.rsqrt(x * x + eps) * gamma
    assert out.shape == x.shape
    assert jnp.allclose(out, ref, atol=1e-5, rtol=1e-5), "mismatch vs reference"

    print("KERNEL_OK")
</pallas_src>

<mosaic_0001>
module attributes {stable_mosaic.version = 11 : i64} {
  func.func @_rmsnorm_kernel(%arg0: i32, %arg1: i32, %arg2: memref<1x512xf32, #tpu.memory_space<vmem>>, %arg3: memref<1x512xf32, #tpu.memory_space<vmem>>, %arg4: memref<1x512xf32, #tpu.memory_space<vmem>>) attributes {dimension_semantics = [#tpu.dimension_semantics<parallel>, #tpu.dimension_semantics<parallel>], iteration_bounds = array<i64: 1, 1>, scalar_prefetch = 0 : i64, scratch_operands = 0 : i64, tpu.core_type = #tpu.core_type<tc>, window_params = [{transform_indices = @transform_0, window_bounds = array<i64: 1, 512>}, {transform_indices = @transform_1, window_bounds = array<i64: 1, 512>}, {transform_indices = @transform_2, window_bounds = array<i64: 1, 512>}]} {
    %c0 = arith.constant 0 : index
    %c0_0 = arith.constant 0 : index
    %0 = vector.load %arg2[%c0, %c0_0] : memref<1x512xf32, #tpu.memory_space<vmem>>, vector<1x512xf32>
    %c0_1 = arith.constant 0 : index
    %c0_2 = arith.constant 0 : index
    %1 = vector.load %arg3[%c0_1, %c0_2] : memref<1x512xf32, #tpu.memory_space<vmem>>, vector<1x512xf32>
    %2 = arith.mulf %0, %0 : vector<1x512xf32>
    %cst = arith.constant 9.99999997E-7 : f32
    %3 = vector.broadcast %cst : f32 to vector<1x512xf32>
    %4 = arith.addf %2, %3 : vector<1x512xf32>
    %5 = math.rsqrt %4 : vector<1x512xf32>
    %6 = arith.mulf %0, %5 : vector<1x512xf32>
    %7 = arith.mulf %6, %1 : vector<1x512xf32>
    %c0_3 = arith.constant 0 : index
    %c0_4 = arith.constant 0 : index
    %8 = vector.load %arg4[%c0_3, %c0_4] : memref<1x512xf32, #tpu.memory_space<vmem>>, vector<1x512xf32>
    tpu.vector_store %arg4[%c0_3, %c0_4], %7 {strides = array<i32>} : memref<1x512xf32, #tpu.memory_space<vmem>>, vector<1x512xf32>,
    return
  }
  func.func @transform_0(%arg0: i32, %arg1: i32) -> (i32, i32) {
    %c0_i32 = arith.constant 0 : i32
    return %arg0, %arg1 : i32, i32
  }
  func.func @transform_1(%arg0: i32, %arg1: i32) -> (i32, i32) {
    %c0_i32 = arith.constant 0 : i32
    %c0_i32_0 = arith.constant 0 : i32
    return %c0_i32, %arg1 : i32, i32
  }
  func.func @transform_2(%arg0: i32, %arg1: i32) -> (i32, i32) {
    %c0_i32 = arith.constant 0 : i32
    return %arg0, %arg1 : i32, i32
  }
}

</mosaic_0001>

<bundles_post_ra>
// kernel: tpu_custom_call.1
= control target key start
LH: loop header
LB: loop body
LE: loop exit
PB: predicated region body
PF: predicated region fallthrough
CT: control target
= control target key end

     0   :  { %7 = vsyncpa [#allocation3], 0  ;;  %s195_s0 = inlined_call_operand.hbm [shape: f32[1,512], index: 0, kind: input, shape index: {}]   ;;  %s196_s1 = inlined_call_operand.hbm [shape: f32[1,512], index: 1, kind: input, shape index: {}]   ;;  %s197_s2 = inlined_call_operand.hbm [shape: f32[1,512], index: 2, kind: output, shape index: {}]  }
   0x1   :  { %8 = vsyncpa [#allocation6], 0 }
   0x2   :  { %9 = vsyncpa [#allocation4], 0  ;;  %s141_s9 = smov [#allocation2]   ;;  %s142_s11 = smov [#allocation5]  }
   0x3   :  { %s16_s10 = sshll.u32 %s141_s9, 4  ;;  %s26_s12 = sshll.u32 %s142_s11, 4  ;;  %s17_s10 = int_to_ptr.vmem [resolvable:$true] %s16_s10  ;;  %s27_s12 = int_to_ptr.vmem [resolvable:$true] %s26_s12 }
   0x4   :  { %s69_s15 = scalar_lea.hbm %s195_s0, 64 }
   0x5   :  { %p70_p0 = scmp.ne.s32.totalorder %s195_s0, %s69_s15  ;;  %p73_p1 = scmp.lt.u32.totalorder %s69_s15, %s195_s0 }
   0x7   :  { %p75_p2 = pnand %p73_p1, %p70_p0 }
   0x9   :  { %78 = shalt.err (!%p75_p2)
}
   0xa   :  { %s79_s20 = scalar_lea.vmem %s17_s10, 64  ;;  %p84_p4 = scmp.lt.s32.totalorder %s17_s10, %s17_s10 }
   0xb   :  { %p80_p3 = scmp.ne.s32.totalorder %s17_s10, %s79_s20  ;;  %p85_p5 = scmp.lt.s32.totalorder %s79_s20, %s79_s20 }
   0xd   :  { %p86_p6 = por %p85_p5, %p84_p4 }
   0xf   :  { %p87_p7 = pnand %p86_p6, %p80_p3 }
  0x11   :  { %90 = shalt.err (!%p87_p7)
}
  0x12   :  { %19 = dma.hbm_to_vmem [thread:$0]  %s195_s0, 64, %s17_s10, [#allocation3]  }
  0x13   :  { %s91_s25 = scalar_lea.hbm %s196_s1, 64 }
  0x14   :  { %p92_p8 = scmp.ne.s32.totalorder %s196_s1, %s91_s25  ;;  %p95_p9 = scmp.lt.u32.totalorder %s91_s25, %s196_s1 }
  0x16   :  { %p97_p10 = pnand %p95_p9, %p92_p8 }
  0x18   :  { %100 = shalt.err (!%p97_p10)
}
  0x19   :  { %s101_s30 = scalar_lea.vmem %s27_s12, 64  ;;  %p106_p12 = scmp.lt.s32.totalorder %s27_s12, %s27_s12 }
  0x1a   :  { %p102_p11 = scmp.ne.s32.totalorder %s27_s12, %s101_s30  ;;  %p107_p13 = scmp.lt.s32.totalorder %s101_s30, %s101_s30 }
  0x1c   :  { %p108_p0 = por %p107_p13, %p106_p12 }
  0x1e   :  { %p109_p1 = pnand %p108_p0, %p102_p11 }
  0x20   :  { %112 = shalt.err (!%p109_p1)
}
  0x21   :  { %29 = dma.hbm_to_vmem [thread:$0]  %s196_s1, 64, %s27_s12, [#allocation6]  }
  0x22   :  { %135 = dma.done.wait [#allocation3], 64  }
  0x23   :  { %136 = vsyncadd [#allocation3], 4294967232 }
  0x24   :  { %137 = dma.done.wait [#allocation6], 64  }
  0x25   :  { %138 = vsyncadd [#allocation6], 4294967232  ;;  %v36_v0 = vld [vmem:[#allocation2] sm:$0xf]  ;;  %v43_v3 = vlaneseq  ;;  %v37_v5 = vld [vmem:[#allocation5] sm:$0xf] }
  0x26   :  { %v38_v1 = vmul.f32 %v36_v0, %v36_v0  ;;  %s143_s4 = smov [#allocation7]  }
  0x27   :  { %s54_s5 = sshll.u32 %s143_s4, 4  ;;  %vm45_vm0 = vcmp.lt.s32.totalorder %v43_v3, 512  ;;  %s55_s5 = int_to_ptr.vmem [resolvable:$true] %s54_s5 }
  0x28   :  { %v39_v2 = vadd.f32 1e-06, %v38_v1  ;;  %s113_s6 = scalar_lea.vmem %s55_s5, 64  ;;  %p118_p3 = scmp.lt.s32.totalorder %s55_s5, %s55_s5 }
  0x29   :  { %p114_p2 = scmp.ne.s32.totalorder %s55_s5, %s113_s6  ;;  %p119_p4 = scmp.lt.s32.totalorder %s113_s6, %s113_s6 }
  0x2a   :  { %67 = vrsqrt.f32 %v39_v2 }
  0x2b   :  { %p120_p5 = por %p119_p4, %p118_p3 }
  0x2d   :  { %p121_p6 = pnand %p120_p5, %p114_p2 }
  0x34   :  { %v68_v4 = vpop.eup %67 }
  0x35   :  { %v41_v6 = vmul.f32 %v68_v4, %v36_v0 }
  0x37   :  { %v42_v7 = vmul.f32 %v41_v6, %v37_v5 }
  0x39   :  { %47 = vst.msk [vmem:[#allocation7] sm:$0xf] %vm45_vm0, %v42_v7 }
  0x3a   :  { %124 = shalt.err (!%p121_p6)
}
  0x3b   :  { %s125_s8 = scalar_lea.hbm %s197_s2, 64 }
  0x3c   :  { %p126_p7 = scmp.ne.s32.totalorder %s197_s2, %s125_s8  ;;  %p129_p8 = scmp.lt.u32.totalorder %s125_s8, %s197_s2 }
  0x3e   :  { %p131_p9 = pnand %p129_p8, %p126_p7 }
  0x40   :  { %134 = shalt.err (!%p131_p9)
}
  0x41   :  { %57 = dma.vmem_to_hbm [thread:$0]  %s55_s5, 64, %s197_s2, [#allocation4]  }
  0x42   :  { %139 = dma.done.wait [#allocation4], 64  }
  0x43   :  { %140 = vsyncadd [#allocation4], 4294967232 }
  0x44   :  { %61 = vsyncpa [#allocation3], 1 }
  0x45   :  { %62 = vsyncpa [#allocation6], 1 }
  0x46   :  { %63 = vsyncpa [#allocation4], 1 }

</bundles_post_ra>
